<compile_context>
chip_gen: v7x
topology: tpu7x:2x2x1
jax: 0.10.0
libtpu: 0.0.40
codegen_flags: <defaults>
</compile_context>

<pallas_src>
import math

import jax
import jax.numpy as jnp
from jax.experimental import pallas as pl
from jax.experimental.pallas import tpu as pltpu


def _split_attention_kernel(x_ref, w_ref, o_ref):
    x = x_ref[...]                                               # (C, TH)
    # Fused channel-mix: single MXU matmul, f32 accumulation.
    a = jnp.dot(w_ref[...], x, preferred_element_type=jnp.float32)
    # Numerically-stable softmax over the channel axis (axis 0), per column.
    a = a - jnp.max(a, axis=0, keepdims=True)
    e = jnp.exp(a)
    inv = pl.reciprocal(jnp.sum(e, axis=0, keepdims=True), approx=False)
    p = e * inv
    # Gate the input and write out.
    o_ref[...] = (x.astype(jnp.float32) * p).astype(o_ref.dtype)


_VMEM_BUDGET = 24 * 1024 * 1024   # conservative: fits default scoped VMEM on all chips


def _pick_h_tile(c, h):
    """Largest lane-aligned H tile that fits the VMEM budget."""
    if h < 128:
        return h                  # full extent (legal: equals the array dim)
    th = 128
    for cand in (256, 512, 1024, 2048):
        # x + out double-buffered f32 -> 16*C*TH bytes; weight double-buf -> 8*C*C.
        if cand <= h and 16 * c * cand + 8 * c * c <= _VMEM_BUDGET:
            th = cand
    return th


def _split_attention_2d(x, w):
    """x: (B, C, H); w: (C, C) pre-fused weight. Returns x * softmax(w @ x, axis=C)."""
    b, c, h = x.shape
    th = _pick_h_tile(c, h)
    return pl.pallas_call(
        _split_attention_kernel,
        out_shape=jax.ShapeDtypeStruct((b, c, h), x.dtype),
        grid_spec=pltpu.PrefetchScalarGridSpec(
            num_scalar_prefetch=0,
            grid=(b, pl.cdiv(h, th)),
            in_specs=[
                pl.BlockSpec((pl.Squeezed(), c, th), lambda i, j: (i, 0, j)),
                pl.BlockSpec((c, c), lambda i, j: (0, 0)),   # weight: grid-invariant
            ],
            out_specs=pl.BlockSpec((pl.Squeezed(), c, th), lambda i, j: (i, 0, j)),
        ),
        compiler_params=pltpu.CompilerParams(
            dimension_semantics=("parallel", "parallel"),
            vmem_limit_bytes=32 * 1024 * 1024,
        ),
    )(x, w)


@jax.jit
def split_attention(x, w1, w2):
    """Fused SplitAttention forward (groups=1).

    x:  (B, C, H) float32
    w1: (C, C)    fc1 Conv1d weight (kernel dim squeezed)
    w2: (C, C)    fc2 Conv1d weight (kernel dim squeezed)
    returns x * softmax(w2 @ w1 @ x, axis=C)
    """
    b, c, h = x.shape
    # Pre-fuse the two 1x1 convs into one channel-mixing matrix (plain XLA,
    # outside the kernel; HIGHEST precision keeps the 1e-5 check honest).
    w = jnp.dot(w2, w1, precision=jax.lax.Precision.HIGHEST)
    if h < 128:
        # Narrow spatial extent: fold batch into the lane axis so the kernel sees
        # a lane-dense (C, B*H) slab.  Columns are independent (softmax is over
        # channels, gating is elementwise), so this reshape commutes with the math.
        x2 = jnp.transpose(x, (1, 0, 2)).reshape(1, c, b * h)
        o2 = _split_attention_2d(x2, w)
        return jnp.transpose(o2.reshape(c, b, h), (1, 0, 2))
    return _split_attention_2d(x, w)


def _reference(x, w1, w2):
    hp = jax.lax.Precision.HIGHEST
    s = jnp.einsum("ck,bkh->bch", w1, x, precision=hp)
    a = jnp.einsum("oc,bch->boh", w2, s, precision=hp)
    return x * jax.nn.softmax(a, axis=1)


if __name__ == "__main__":
    key = jax.random.PRNGKey(0)
    kx, k1, k2, kx2 = jax.random.split(key, 4)

    # Small shapes consistent with the module: (batch, channels, height/seq).
    B, C, H = 2, 32, 16
    bound = 1.0 / math.sqrt(C)
    x = jax.random.normal(kx, (B, C, H), dtype=jnp.float32)
    w1 = jax.random.uniform(k1, (C, C), minval=-bound, maxval=bound, dtype=jnp.float32)
    w2 = jax.random.uniform(k2, (C, C), minval=-bound, maxval=bound, dtype=jnp.float32)

    out = jax.block_until_ready(split_attention(x, w1, w2))
    ref = _reference(x, w1, w2)
    assert out.shape == (B, C, H)
    assert jnp.allclose(out, ref, atol=1e-5, rtol=1e-5), float(jnp.max(jnp.abs(out - ref)))

    # Also exercise the lane-tiled path (H >= 128, non-dividing -> masked last tile).
    H2 = 200
    x2 = jax.random.normal(kx2, (B, C, H2), dtype=jnp.float32)
    out2 = jax.block_until_ready(split_attention(x2, w1, w2))
    ref2 = _reference(x2, w1, w2)
    assert jnp.allclose(out2, ref2, atol=1e-5, rtol=1e-5), float(jnp.max(jnp.abs(out2 - ref2)))

    # TODO(synk): groups > 1 is not implemented — the reference PyTorch forward is
    # itself shape-inconsistent for groups != 1, so only the groups=1 default is meaningful.
    print("KERNEL_OK")
</pallas_src>

<mosaic_0001>
module attributes {stable_mosaic.version = 11 : i64} {
  func.func @_split_attention_kernel(%arg0: i32, %arg1: i32, %arg2: memref<1x32x32xf32, #tpu.memory_space<vmem>>, %arg3: memref<32x32xf32, #tpu.memory_space<vmem>>, %arg4: memref<1x32x32xf32, #tpu.memory_space<vmem>>) attributes {dimension_semantics = [#tpu.dimension_semantics<parallel>, #tpu.dimension_semantics<parallel>], iteration_bounds = array<i64: 1, 1>, scalar_prefetch = 0 : i64, scratch_operands = 0 : i64, tpu.core_type = #tpu.core_type<tc>, window_params = [{transform_indices = @transform_0, window_bounds = array<i64: 1, 32, 32>}, {pipeline_mode = #tpu.pipeline_mode<synchronous>, transform_indices = @transform_1, window_bounds = array<i64: 32, 32>}, {transform_indices = @transform_2, window_bounds = array<i64: 1, 32, 32>}]} {
    %c0 = arith.constant 0 : index
    %c0_0 = arith.constant 0 : index
    %c0_1 = arith.constant 0 : index
    %0 = vector.load %arg2[%c0, %c0_0, %c0_1] : memref<1x32x32xf32, #tpu.memory_space<vmem>>, vector<1x32x32xf32>
    %1 = vector.shape_cast %0 : vector<1x32x32xf32> to vector<32x32xf32>
    %c0_2 = arith.constant 0 : index
    %c0_3 = arith.constant 0 : index
    %2 = vector.load %arg3[%c0_2, %c0_3] : memref<32x32xf32, #tpu.memory_space<vmem>>, vector<32x32xf32>
    %cst = arith.constant dense<0.000000e+00> : vector<32x32xf32>
    %3 = tpu.matmul %2, %1, %cst {dimension_numbers = #tpu.dot_dimension_numbers<[1], [0], [0], [1], [0, 0, 1, 1], [], []>} : vector<32x32xf32>, vector<32x32xf32>, vector<32x32xf32> -> vector<32x32xf32>
    %cst_4 = arith.constant dense<0xFF800000> : vector<32xf32>
    %4 = vector.multi_reduction <maximumf>, %3, %cst_4 [0] : vector<32x32xf32> to vector<32xf32>
    %5 = vector.shape_cast %4 : vector<32xf32> to vector<1x32xf32>
    %6 = vector.broadcast %5 : vector<1x32xf32> to vector<32x32xf32>
    %7 = arith.subf %3, %6 : vector<32x32xf32>
    %8 = math.exp %7 : vector<32x32xf32>
    %cst_5 = arith.constant dense<0.000000e+00> : vector<32xf32>
    %9 = vector.multi_reduction <add>, %8, %cst_5 [0] : vector<32x32xf32> to vector<32xf32>
    %10 = vector.shape_cast %9 : vector<32xf32> to vector<1x32xf32>
    %11 = tpu.reciprocal %10 : vector<1x32xf32> -> vector<1x32xf32>
    %12 = vector.broadcast %11 : vector<1x32xf32> to vector<32x32xf32>
    %13 = arith.mulf %8, %12 : vector<32x32xf32>
    %14 = arith.mulf %1, %13 : vector<32x32xf32>
    %c0_6 = arith.constant 0 : index
    %c0_7 = arith.constant 0 : index
    %c0_8 = arith.constant 0 : index
    %15 = vector.load %arg4[%c0_6, %c0_7, %c0_8] : memref<1x32x32xf32, #tpu.memory_space<vmem>>, vector<1x32x32xf32>
    %16 = vector.shape_cast %15 : vector<1x32x32xf32> to vector<32x32xf32>
    %17 = vector.shape_cast %14 : vector<32x32xf32> to vector<1x32x32xf32>
    tpu.vector_store %arg4[%c0_6, %c0_7, %c0_8], %17 {strides = array<i32>} : memref<1x32x32xf32, #tpu.memory_space<vmem>>, vector<1x32x32xf32>,
    return
  }
  func.func @transform_0(%arg0: i32, %arg1: i32) -> (i32, i32, i32) {
    %c0_i32 = arith.constant 0 : i32
    %c0_i32_0 = arith.constant 0 : i32
    return %arg0, %c0_i32, %arg1 : i32, i32, i32
  }
  func.func @transform_1(%arg0: i32, %arg1: i32) -> (i32, i32) {
    %c0_i32 = arith.constant 0 : i32
    %c0_i32_0 = arith.constant 0 : i32
    %c0_i32_1 = arith.constant 0 : i32
    return %c0_i32, %c0_i32_0 : i32, i32
  }
  func.func @transform_2(%arg0: i32, %arg1: i32) -> (i32, i32, i32) {
    %c0_i32 = arith.constant 0 : i32
    %c0_i32_0 = arith.constant 0 : i32
    return %arg0, %c0_i32, %arg1 : i32, i32, i32
  }
}

</mosaic_0001>

<bundles_post_ra>
// kernel: split_attention.1
= control target key start
LH: loop header
LB: loop body
LE: loop exit
PB: predicated region body
PF: predicated region fallthrough
CT: control target
= control target key end

     0   :  { %vm19_vm0 = vcmask 261120   ;;  %s303_s0 = inlined_call_operand.vmem [shape: f32[1,32,32], index: 0, kind: input, shape index: {}]   ;;  %s304_s1 = inlined_call_operand.vmem [shape: f32[32,32], index: 1, kind: input, shape index: {}]   ;;  %s305_s2 = inlined_call_operand.vmem [shape: f32[1,32,32], index: 2, kind: output, shape index: {}]  }
   0x1   :  { %v238_v0 = vld [vmem:[%s303_s0] sm:$0xff]  ;;  %v243_v1 = vld [vmem:[%s303_s0 + $0x8] sm:$0xff]  ;;  %v248_v2 = vld [vmem:[%s303_s0 + $0x10] sm:$0xff] }
   0x2   :  { %v198_v3 = vpack.c.bf16 %v243_v1, %v238_v0  ;;  %v255_v4 = vld [vmem:[%s303_s0 + $0x18] sm:$0xff]  ;;  %v15_v5 = vld [vmem:[%s304_s1] sm:$0xff]  ;;  %v17_v6 = vld [vmem:[%s304_s1 + $0x10] sm:$0xff] }
   0x3   :  { %v202_v7 = vpack.c.bf16 %v255_v4, %v248_v2  ;;  %192 = vmatprep.mubr.msk.f32.mxu0 %vm19_vm0, %v15_v5  ;;  %195 = vmatprep.mubr.msk.f32.mxu1 %vm19_vm0, %v17_v6  ;;  %v16_v8 = vld [vmem:[%s304_s1 + $0x8] sm:$0xff]  ;;  %v18_v9 = vld [vmem:[%s304_s1 + $0x18] sm:$0xff] }
   0x4   :  { %199 = vmatprep.subr.bf16.mxu0 %v198_v3  ;;  %206 = vmatprep.subr.bf16.mxu1 %v198_v3 }
   0x5   :  { %201 = vmatpush3.bf16.msra.mxu0 %v198_v3  ;;  %208 = vmatpush3.bf16.msra.mxu1 %v198_v3 }
   0x6   :  { %203 = vmatprep.subr.bf16.mxu0 %v202_v7  ;;  %207 = vmatprep.subr.bf16.mxu1 %v202_v7 }
   0x9   :  { %205 = vmatpush3.bf16.msra.mxu0 %v202_v7  ;;  %209 = vmatpush3.bf16.msra.mxu1 %v202_v7 }
   0xc   :  { %193 = vmatmul.mubr.msk.f32.vlgmr.msra.gmra.mrb[0].mxu0 %vm19_vm0, %v16_v8  ;;  %196 = vmatmul.mubr.msk.f32.vlgmr.msra.gmra.mrb[0].mxu1 %vm19_vm0, %v18_v9 }
  0xdf   :  { %v194_v10 = vpop.f32.mrb[0].mxu0  ;;  %v197_v11 = vpop.f32.mrb[0].mxu1 }
  0xe0   :  { %v118_v12 = vsel %vm19_vm0, %v194_v10, -inf  ;;  %v120_v13 = vsel %vm19_vm0, %v197_v11, -inf  ;;  %v98_v14 = vpop.f32.mrb[1].mxu0  ;;  %v108_v15 = vpop.f32.mrb[1].mxu1 }
  0xe1   :  { %v117_v16 = vsel %vm19_vm0, %v98_v14, -inf  ;;  %v119_v17 = vsel %vm19_vm0, %v108_v15, -inf }
  0xe2   :  { %v121_v18 = vmax.f32 %v117_v16, %v118_v12  ;;  %v122_v19 = vmax.f32 %v119_v17, %v120_v13 }
  0xe4   :  { %v123_v20 = vmax.f32 %v121_v18, %v122_v19 }
  0xe6   :  { %v124_v21 = vrot.slane %v123_v20, 4 }
  0xe8   :  { %v125_v22 = vmax.f32 %v123_v20, %v124_v21 }
  0xea   :  { %v126_v23 = vrot.slane %v125_v22, 2 }
  0xec   :  { %v127_v24 = vmax.f32 %v125_v22, %v126_v23 }
  0xee   :  { %v128_v25 = vrot.slane %v127_v24, 1 }
  0xf0   :  { %v129_v26 = vmax.f32 %v127_v24, %v128_v25 }
  0xf2   :  { %v130_v27 = vsub.f32 %v98_v14, %v129_v26  ;;  %v131_v28 = vsub.f32 %v194_v10, %v129_v26  ;;  %v132_v29 = vsub.f32 %v108_v15, %v129_v26  ;;  %v133_v30 = vsub.f32 %v197_v11, %v129_v26 }
  0xf4   :  { %v134_v31 = vmul.f32 1.442695, %v130_v27  ;;  %v136_v32 = vmul.f32 1.442695, %v131_v28  ;;  %v138_v33 = vmul.f32 1.442695, %v132_v29 }
  0xf5   :  { %v140_v34 = vmul.f32 1.442695, %v133_v30 }
  0xf6   :  { %210 = vpow2.f32 %v134_v31 }
  0xf7   :  { %212 = vpow2.f32 %v136_v32 }
  0xf8   :  { %214 = vpow2.f32 %v138_v33 }
  0xf9   :  { %216 = vpow2.f32 %v140_v34 }
 0x100   :  { %v211_v35 = vpop.eup %210 }
 0x101   :  { %v213_v36 = vpop.eup %212  ;;  %v142_v37 = vsel %vm19_vm0, %v211_v35, 0.0 }
 0x102   :  { %v215_v38 = vpop.eup %214  ;;  %v143_v39 = vsel %vm19_vm0, %v213_v36, 0.0 }
 0x103   :  { %v217_v40 = vpop.eup %216  ;;  %v144_v41 = vadd.f32 %v143_v39, %v142_v37  ;;  %v145_v42 = vsel %vm19_vm0, %v215_v38, 0.0 }
 0x104   :  { %v147_v44 = vsel %vm19_vm0, %v217_v40, 0.0 }
 0x105   :  { %v146_v43 = vadd.f32 %v145_v42, %v144_v41 }
 0x107   :  { %v148_v45 = vadd.f32 %v147_v44, %v146_v43 }
 0x109   :  { %v149_v46 = vrot.slane %v148_v45, 4 }
 0x10b   :  { %v150_v47 = vadd.f32 %v149_v46, %v148_v45 }
 0x10d   :  { %v151_v48 = vrot.slane %v150_v47, 2 }
 0x10f   :  { %v152_v49 = vadd.f32 %v151_v48, %v150_v47 }
 0x111   :  { %v153_v50 = vrot.slane %v152_v49, 1 }
 0x113   :  { %v154_v51 = vadd.f32 %v153_v50, %v152_v49 }
 0x115   :  { %218 = vrcp.f32 %v154_v51 }
 0x11f   :  { %v219_v52 = vpop.eup %218 }
 0x120   :  { %v156_v53 = vmul.f32 %v219_v52, %v211_v35  ;;  %v157_v54 = vmul.f32 %v219_v52, %v213_v36  ;;  %v158_v55 = vmul.f32 %v219_v52, %v215_v38  ;;  %v159_v56 = vmul.f32 %v219_v52, %v217_v40 }
 0x122   :  { %v160_v57 = vmul.f32 %v156_v53, %v238_v0  ;;  %v161_v58 = vmul.f32 %v157_v54, %v243_v1  ;;  %v162_v59 = vmul.f32 %v158_v55, %v248_v2  ;;  %v163_v60 = vmul.f32 %v159_v56, %v255_v4 }
 0x124   :  { %164 = vst.msk [vmem:[%s305_s2] sm:$0xff] %vm19_vm0, %v160_v57  ;;  %165 = vst.msk [vmem:[%s305_s2 + $0x8] sm:$0xff] %vm19_vm0, %v161_v58 }
 0x125   :  { %166 = vst.msk [vmem:[%s305_s2 + $0x10] sm:$0xff] %vm19_vm0, %v162_v59  ;;  %167 = vst.msk [vmem:[%s305_s2 + $0x18] sm:$0xff] %vm19_vm0, %v163_v60 }

</bundles_post_ra>
